<compile_context>
chip_gen: v5e
topology: v5e:2x2
jax: 0.10.0
libtpu: 0.0.40
codegen_flags: <defaults>
</compile_context>

<pallas_src>
import math

import numpy as np
import jax
import jax.numpy as jnp
from jax.experimental import pallas as pl
from jax.experimental.pallas import tpu as pltpu


def _make_kernel(half_dim: int):
    def kernel(t_ref, freq_ref, w1_ref, b1_ref, w2_ref, b2_ref, o_ref):
        t = t_ref[...]                        # [n, 1] f32
        freq = freq_ref[...]                  # [1, quarter_dim] f32 (freq tiled x2)

        ang = t * freq                        # [n, quarter_dim]
        lane = jax.lax.broadcasted_iota(jnp.int32, ang.shape, 1)
        # First half_dim lanes -> sin, remaining lanes -> cos (== torch.cat order).
        emb = jnp.where(lane < half_dim, jnp.sin(ang), jnp.cos(ang))

        # linear1 (bf16 inputs, f32 MXU accumulate) + SiLU
        h = jnp.dot(emb.astype(jnp.bfloat16), w1_ref[...],
                    preferred_element_type=jnp.float32) + b1_ref[...]
        h = h * jax.nn.sigmoid(h)

        # linear2
        out = jnp.dot(h.astype(jnp.bfloat16), w2_ref[...],
                      preferred_element_type=jnp.float32) + b2_ref[...]
        o_ref[...] = out.astype(o_ref.dtype)

    return kernel


def sinusoidal_embedding(t, w1, b1, w2, b2, emb_dim):
    """t: [n] float32 -> [n, emb_dim] float32."""
    assert t.ndim == 1
    assert emb_dim % 8 == 0 and emb_dim >= 16, "emb_dim must be a multiple of 8 and >= 16"
    n = t.shape[0]
    half_dim = emb_dim // 8
    quarter_dim = emb_dim // 4

    # Host-side constant: exp(arange(half_dim) * -log(10000)/(half_dim-1)),
    # tiled to quarter_dim lanes so sin and cos share one lane-dense tile.
    e = math.log(10000.0) / (half_dim - 1)
    freq = np.exp(np.arange(half_dim, dtype=np.float32) * -e)
    freq_tiled = jnp.asarray(np.tile(freq, 2)[None, :])          # [1, quarter_dim]

    t2d = t.astype(jnp.float32).reshape(n, 1)
    w1_bf16 = w1.astype(jnp.bfloat16)                            # [quarter_dim, emb_dim]
    w2_bf16 = w2.astype(jnp.bfloat16)                            # [emb_dim, emb_dim]
    b1_2d = b1.astype(jnp.float32).reshape(1, emb_dim)
    b2_2d = b2.astype(jnp.float32).reshape(1, emb_dim)

    # Grid-free call: every operand is a full-array VMEM block (no pipelining,
    # no grid-step overhead). Everything here is tiny relative to VMEM.
    # TODO(synk): for n >> 8, add a "parallel" row grid (Tm multiple of 8, e.g.
    # 256) so the batch shards across v7x's two TensorCores and fills the MXU.
    vmem_specs = [pl.BlockSpec(memory_space=pltpu.MemorySpace.VMEM) for _ in range(6)]
    return pl.pallas_call(
        _make_kernel(half_dim),
        out_shape=jax.ShapeDtypeStruct((n, emb_dim), jnp.float32),
        in_specs=vmem_specs,
        out_specs=pl.BlockSpec(memory_space=pltpu.MemorySpace.VMEM),
    )(t2d, freq_tiled, w1_bf16, b1_2d, w2_bf16, b2_2d)


def reference(t, w1, b1, w2, b2, emb_dim):
    """Pure-JAX f32 reference mirroring the PyTorch forward."""
    half_dim = emb_dim // 8
    e = math.log(10000.0) / (half_dim - 1)
    freq = jnp.exp(jnp.arange(half_dim, dtype=jnp.float32) * -e)
    ang = t[:, None] * freq[None, :]
    emb = jnp.concatenate([jnp.sin(ang), jnp.cos(ang)], axis=-1)
    h = emb @ w1 + b1
    h = h * jax.nn.sigmoid(h)
    return h @ w2 + b2


if __name__ == "__main__":
    emb_dim = 128        # -> half_dim = 16, linear1: 32 -> 128, linear2: 128 -> 128
    n = 8                # number of timesteps

    key = jax.random.PRNGKey(0)
    k_t, k_w1, k_b1, k_w2, k_b2 = jax.random.split(key, 5)

    # Deterministic synthetic parameters (Linear weights stored as (in, out)).
    t = jax.random.uniform(k_t, (n,), jnp.float32, 0.0, 1000.0)
    w1 = jax.random.normal(k_w1, (emb_dim // 4, emb_dim), jnp.float32) * 0.05
    b1 = jax.random.normal(k_b1, (emb_dim,), jnp.float32) * 0.01
    w2 = jax.random.normal(k_w2, (emb_dim, emb_dim), jnp.float32) * 0.05
    b2 = jax.random.normal(k_b2, (emb_dim,), jnp.float32) * 0.01

    out = sinusoidal_embedding(t, w1, b1, w2, b2, emb_dim)
    out = jax.block_until_ready(out)

    ref = reference(t, w1, b1, w2, b2, emb_dim)
    assert out.shape == (n, emb_dim)
    # Tolerance accounts for bf16 weight/activation inputs to the MXU
    # (f32 accumulation); observed error is ~1e-3 absolute at these scales.
    assert jnp.allclose(out, ref, atol=2e-2, rtol=2e-2), "mismatch vs reference"

    print("KERNEL_OK")
</pallas_src>

<mosaic_0001>
module attributes {stable_mosaic.version = 11 : i64} {
  func.func @kernel(%arg0: memref<8x1xf32, #tpu.memory_space<vmem>>, %arg1: memref<1x32xf32, #tpu.memory_space<vmem>>, %arg2: memref<32x128xbf16, #tpu.memory_space<vmem>>, %arg3: memref<1x128xf32, #tpu.memory_space<vmem>>, %arg4: memref<128x128xbf16, #tpu.memory_space<vmem>>, %arg5: memref<1x128xf32, #tpu.memory_space<vmem>>, %arg6: memref<8x128xf32, #tpu.memory_space<vmem>>) attributes {dimension_semantics = [], scalar_prefetch = 0 : i64, scratch_operands = 0 : i64, tpu.core_type = #tpu.core_type<tc>} {
    %c0 = arith.constant 0 : index
    %c0_0 = arith.constant 0 : index
    %0 = vector.load %arg0[%c0, %c0_0] : memref<8x1xf32, #tpu.memory_space<vmem>>, vector<8x1xf32>
    %c0_1 = arith.constant 0 : index
    %c0_2 = arith.constant 0 : index
    %1 = vector.load %arg1[%c0_1, %c0_2] : memref<1x32xf32, #tpu.memory_space<vmem>>, vector<1x32xf32>
    %2 = vector.broadcast %0 : vector<8x1xf32> to vector<8x32xf32>
    %3 = vector.broadcast %1 : vector<1x32xf32> to vector<8x32xf32>
    %4 = arith.mulf %2, %3 : vector<8x32xf32>
    %5 = tpu.iota {dimensions = array<i32: 1>} : vector<8x32xi32>
    %c16_i32 = arith.constant 16 : i32
    %6 = vector.broadcast %c16_i32 : i32 to vector<8x32xi32>
    %7 = arith.cmpi slt, %5, %6 : vector<8x32xi32>
    %8 = math.sin %4 : vector<8x32xf32>
    %9 = math.cos %4 : vector<8x32xf32>
    %10 = arith.select %7, %8, %9 : vector<8x32xi1>, vector<8x32xf32>
    %11 = arith.truncf %10 : vector<8x32xf32> to vector<8x32xbf16>
    %c0_3 = arith.constant 0 : index
    %c0_4 = arith.constant 0 : index
    %12 = vector.load %arg2[%c0_3, %c0_4] : memref<32x128xbf16, #tpu.memory_space<vmem>>, vector<32x128xbf16>
    %cst = arith.constant dense<0.000000e+00> : vector<8x128xf32>
    %13 = tpu.matmul %11, %12, %cst {dimension_numbers = #tpu.dot_dimension_numbers<[1], [0], [0], [1], [0, 0, 1, 1], [], []>} : vector<8x32xbf16>, vector<32x128xbf16>, vector<8x128xf32> -> vector<8x128xf32>
    %c0_5 = arith.constant 0 : index
    %c0_6 = arith.constant 0 : index
    %14 = vector.load %arg3[%c0_5, %c0_6] : memref<1x128xf32, #tpu.memory_space<vmem>>, vector<1x128xf32>
    %15 = vector.broadcast %14 : vector<1x128xf32> to vector<8x128xf32>
    %16 = arith.addf %13, %15 : vector<8x128xf32>
    %17 = arith.negf %16 : vector<8x128xf32>
    %18 = math.exp %17 : vector<8x128xf32>
    %cst_7 = arith.constant 1.000000e+00 : f32
    %19 = vector.broadcast %cst_7 : f32 to vector<8x128xf32>
    %20 = arith.addf %19, %18 : vector<8x128xf32>
    %21 = arith.divf %19, %20 : vector<8x128xf32>
    %22 = arith.mulf %16, %21 : vector<8x128xf32>
    %23 = arith.truncf %22 : vector<8x128xf32> to vector<8x128xbf16>
    %c0_8 = arith.constant 0 : index
    %c0_9 = arith.constant 0 : index
    %24 = vector.load %arg4[%c0_8, %c0_9] : memref<128x128xbf16, #tpu.memory_space<vmem>>, vector<128x128xbf16>
    %cst_10 = arith.constant dense<0.000000e+00> : vector<8x128xf32>
    %25 = tpu.matmul %23, %24, %cst_10 {dimension_numbers = #tpu.dot_dimension_numbers<[1], [0], [0], [1], [0, 0, 1, 1], [], []>} : vector<8x128xbf16>, vector<128x128xbf16>, vector<8x128xf32> -> vector<8x128xf32>
    %c0_11 = arith.constant 0 : index
    %c0_12 = arith.constant 0 : index
    %26 = vector.load %arg5[%c0_11, %c0_12] : memref<1x128xf32, #tpu.memory_space<vmem>>, vector<1x128xf32>
    %27 = vector.broadcast %26 : vector<1x128xf32> to vector<8x128xf32>
    %28 = arith.addf %25, %27 : vector<8x128xf32>
    %c0_13 = arith.constant 0 : index
    %c0_14 = arith.constant 0 : index
    %29 = vector.load %arg6[%c0_13, %c0_14] : memref<8x128xf32, #tpu.memory_space<vmem>>, vector<8x128xf32>
    tpu.vector_store %arg6[%c0_13, %c0_14], %28 {strides = array<i32>} : memref<8x128xf32, #tpu.memory_space<vmem>>, vector<8x128xf32>,
    return
  }
}

</mosaic_0001>

<bundles_post_ra>
// kernel: tpu_custom_call.1
= control target key start
LH: loop header
LB: loop body
LE: loop exit
PB: predicated region body
PF: predicated region fallthrough
CT: control target
= control target key end

     0   :  { %11 = vsyncpa [#allocation3], 0  ;;  %s825_s0 = inlined_call_operand.vmem [shape: f32[8,1], index: 0, kind: input, shape index: {}]   ;;  %s826_s1 = inlined_call_operand.vmem [shape: f32[1,32], index: 1, kind: input, shape index: {}]   ;;  %s827_s2 = inlined_call_operand.hbm [shape: bf16[32,128], index: 2, kind: input, shape index: {}]   ;;  %s828_s3 = inlined_call_operand.vmem [shape: f32[1,128], index: 3, kind: input, shape index: {}]   ;;  %s829_s4 = inlined_call_operand.hbm [shape: bf16[128,128], index: 4, kind: input, shape index: {}]   ;;  %s830_s5 = inlined_call_operand.vmem [shape: f32[1,128], index: 5, kind: input, shape index: {}]   ;;  %s831_s6 = inlined_call_operand.hbm [shape: f32[8,128], index: 6, kind: output, shape index: {}]  }
   0x1   :  { %12 = vsyncpa [#allocation6], 0 }
   0x2   :  { %13 = vsyncpa [#allocation4], 0  ;;  %s22_s23 = sshll.u32 %s827_s2, 4  ;;  %s696_s24 = smov [#allocation2]   ;;  %s23_s23 = int_to_ptr.hbm [resolvable:$true] %s22_s23 }
   0x3   :  { %s24_s25 = sshll.u32 %s696_s24, 4  ;;  %s37_s28 = sshll.u32 %s829_s4, 4  ;;  %s25_s25 = int_to_ptr.vmem [resolvable:$true] %s24_s25  ;;  %s38_s28 = int_to_ptr.hbm [resolvable:$true] %s37_s28 }
   0x4   :  { %s697_s29 = smov 64   ;;  %s698_s30 = smov 4  }
   0x5   :  { %30 = dma.hbm_to_vmem [thread:$0]  %s23_s23, 256, %s25_s25, [#allocation3], %s697_s29, %s697_s29, %s698_s30  }
   0x6   :  { %s699_s7 = smov [#allocation5]  }
   0x7   :  { %s39_s8 = sshll.u32 %s699_s7, 4  ;;  %s40_s8 = int_to_ptr.vmem [resolvable:$true] %s39_s8 }
   0x8   :  { %45 = dma.hbm_to_vmem [thread:$0]  %s38_s28, 1024, %s40_s8, [#allocation6], %s697_s29, %s697_s29, %s698_s30  }
   0x9   :  { %690 = dma.done.wait [#allocation3], 256  }
   0xa   :  { %691 = vsyncadd [#allocation3], 4294967040 }
   0xb   :  { %692 = dma.done.wait [#allocation6], 1024  }
   0xc   :  { %693 = vsyncadd [#allocation6], 4294966272  ;;  %v700_v0 = vmov 0   ;;  %v57_v1 = vld [vmem:[%s825_s0] sm:$0xff]  ;;  %v701_v16 = vmov 683565275  }
   0xd   :  { %610 = vset.pattern.permute.xlu0 %v700_v0  ;;  %v611_v2 = vld [vmem:[%s826_s1] ss:$0 sm:$0xff]  ;;  %v702_v18 = vmov 2475754826   ;;  %v703_v21 = vmov 2131351028  }
   0xe   :  { %61 = vperm.xlu0 %610, %v57_v1   ;;  %v704_v24 = vmov 2102212464   ;;  %v705_v27 = vmov 920167782   ;;  %v706_v30 = vmov 1326507024  }
   0xf   :  { %s707_s12 = smov [#allocation7]   ;;  %s529_s16 = sshll.u32 %s831_s6, 4  ;;  %s530_s16 = int_to_ptr.hbm [resolvable:$true] %s529_s16 }
  0x10   :  { %s527_s13 = sshll.u32 %s707_s12, 4  ;;  %s528_s13 = int_to_ptr.vmem [resolvable:$true] %s527_s13 }
  0x80   :  { %v62_v3 = vpop.permute.xlu0 %61 }
  0x81   :  { %v756_v4 = vmul.f32 %v611_v2, %v62_v3 }
  0x83   :  { %v74_v5 = vand.u32 2139095040, %v756_v4  ;;  %v71_v8 = vand.u32 2147483647, %v756_v4  ;;  %vm73_vm12 = vcmp.lt.s32.totalorder %v756_v4, 0 }
  0x85   :  { %v75_v6 = vshrl.u32 %v74_v5, 23  ;;  %v78_v10 = vand.u32 8388607, %v71_v8  ;;  %vm72_vm13 = vcmp.le.f32.partialorder %v71_v8, 0.7853982 }
  0x87   :  { %v540_v7 = vadd.s32 4294967169, %v75_v6  ;;  %v79_v14 = vor.u32 8388608, %v78_v10 }
  0x89   :  { %v81_v9 = vadd.s32 1, %v540_v7  ;;  %v773_v37 = vshll.u32 %v79_v14, 8 }
  0x8b   :  { %vm82_vm0 = vcmp.gt.s32.totalorder %v81_v9, 0  ;;  %v120_v46 = vand.u32 65535, %v773_v37  ;;  %v121_v47 = vshrl.u32 %v773_v37, 16 }
  0x8c   :  { %v83_v11 = vsel %vm82_vm0, %v81_v9, 0 }
  0x8d   :  { %v85_v12 = vand.u32 31, %v83_v11  ;;  %v764_v15 = vshrl.u32 %v83_v11, 5 }
  0x8f   :  { %v762_v13 = vsub.s32 32, %v85_v12  ;;  %v88_v17 = vshll.u32 %v701_v16, %v85_v12  ;;  %v91_v19 = vshll.u32 %v702_v18, %v85_v12  ;;  %v94_v23 = vshll.u32 %v703_v21, %v85_v12 }
  0x90   :  { %v97_v26 = vshll.u32 %v704_v24, %v85_v12  ;;  %v100_v29 = vshll.u32 %v705_v27, %v85_v12  ;;  %vm103_vm1 = vcmp.lt.s32.totalorder %v764_v15, 1  ;;  %vm106_vm2 = vcmp.lt.s32.totalorder %v764_v15, 4 }
  0x91   :  { %v89_v20 = vshrl.u32 %v702_v18, %v762_v13  ;;  %v92_v22 = vshrl.u32 %v703_v21, %v762_v13  ;;  %v95_v25 = vshrl.u32 %v704_v24, %v762_v13  ;;  %v98_v28 = vshrl.u32 %v705_v27, %v762_v13 }
  0x92   :  { %v101_v31 = vshrl.u32 %v706_v30, %v762_v13  ;;  %vm105_vm3 = vcmp.lt.s32.totalorder %v764_v15, 3  ;;  %vm104_vm4 = vcmp.lt.s32.totalorder %v764_v15, 2  ;;  %v87_v11 = vshrl.u32 %v701_v16, %v762_v13 }
  0x93   :  { %v90_v32 = vor.u32 %v89_v20, %v88_v17  ;;  %v93_v33 = vor.u32 %v92_v22, %v91_v19  ;;  %v96_v34 = vor.u32 %v95_v25, %v94_v23  ;;  %v99_v35 = vor.u32 %v98_v28, %v97_v26 }
  0x94   :  { %v102_v36 = vor.u32 %v101_v31, %v100_v29 }
  0x95   :  { %v111_v38 = vsel %vm103_vm1, %v90_v32, %v93_v33  ;;  %v115_v39 = vsel %vm103_vm1, %v93_v33, %v96_v34  ;;  %v112_v40 = vsel %vm106_vm2, %v99_v35, 920167782  ;;  %v108_v7 = vsel %vm106_vm2, %v96_v34, 2102212464 }
  0x96   :  { %v116_v41 = vsel %vm106_vm2, %v102_v36, 1326507024  ;;  %v113_v42 = vsel %vm105_vm3, %v96_v34, %v112_v40  ;;  %v107_v20 = vsel %vm103_vm1, %v87_v11, %v90_v32  ;;  %v109_v21 = vsel %vm105_vm3, %v93_v33, %v108_v7  ;;  %v589_v40 = vld [vmem:[#allocation2 + $0x8] sm:$0xff] }
  0x97   :  { %v117_v43 = vsel %vm105_vm3, %v99_v35, %v116_v41  ;;  %v114_v44 = vsel %vm104_vm4, %v111_v38, %v113_v42  ;;  %v110_v13 = vsel %vm104_vm4, %v107_v20, %v109_v21  ;;  %412 = vmatpush.bf16.msra.mxu0 %v589_v40 }
  0x98   :  { %v118_v45 = vsel %vm104_vm4, %v115_v39, %v117_v43  ;;  %v144_v50 = vand.u32 65535, %v114_v44  ;;  %v145_v51 = vshrl.u32 %v114_v44, 16  ;;  %v164_v28 = vmul.u32 %v773_v37, %v110_v13  ;;  %v588_v44 = vld [vmem:[#allocation2] sm:$0xff] }
  0x99   :  { %v122_v48 = vand.u32 65535, %v118_v45  ;;  %v123_v49 = vshrl.u32 %v118_v45, 16 }
  0x9a   :  { %v147_v54 = vmul.u32 %v145_v51, %v120_v46  ;;  %v148_v55 = vmul.u32 %v144_v50, %v121_v47  ;;  %v146_v59 = vmul.u32 %v144_v50, %v120_v46  ;;  %v149_v63 = vmul.u32 %v145_v51, %v121_v47 }
  0x9b   :  { %v125_v52 = vmul.u32 %v123_v49, %v120_v46  ;;  %v126_v53 = vmul.u32 %v122_v48, %v121_v47  ;;  %v124_v56 = vmul.u32 %v122_v48, %v120_v46  ;;  %v127_v58 = vmul.u32 %v123_v49, %v121_v47  ;;  %413 = vmatpush.bf16.msra.mxu0 %v588_v44 }
  0x9c   :  { %v150_v60 = vshll.u32 %v147_v54, 16  ;;  %v152_v2 = vshll.u32 %v148_v55, 16  ;;  %v151_v18 = vshrl.u32 %v147_v54, 16  ;;  %v153_v24 = vshrl.u32 %v148_v55, 16 }
  0x9d   :  { %v128_v57 = vshll.u32 %v125_v52, 16  ;;  %v130_v61 = vshll.u32 %v126_v53, 16  ;;  %v129_v12 = vshrl.u32 %v125_v52, 16  ;;  %v131_v22 = vshrl.u32 %v126_v53, 16 }
  0x9e   :  { %vm154_vm6 = vc.u32 %v146_v59, %v150_v60  ;;  %v156_v3 = vadd.s32 %v150_v60, %v146_v59 }
  0x9f   :  { %vm132_vm5 = vc.u32 %v124_v56, %v128_v57  ;;  %v134_v62 = vadd.s32 %v128_v57, %v124_v56  ;;  %v155_v6 = vsel %vm154_vm6, 1, %v700_v0  ;;  %vm402_vm6 = vcmask 261120  }
  0xa0   :  { %v133_v1 = vsel %vm132_vm5, 1, %v700_v0  ;;  %v157_v10 = vadd.s32 %v155_v6, %v149_v63  ;;  %vm158_vm8 = vc.u32 %v156_v3, %v152_v2  ;;  %v160_v27 = vadd.s32 %v156_v3, %v152_v2 }
  0xa1   :  { %v135_v5 = vadd.s32 %v133_v1, %v127_v58  ;;  %vm136_vm7 = vc.u32 %v134_v62, %v130_v61  ;;  %v159_v17 = vsel %vm158_vm8, 1, %v700_v0  ;;  %v68_v6 = vlaneseq }
  0xa2   :  { %v137_v9 = vsel %vm136_vm7, 1, %v700_v0  ;;  %v161_v19 = vadd.s32 %v159_v17, %v157_v10  ;;  %vm214_vm5 = vweird.f32 %v756_v4 }
  0xa3   :  { %v139_v14 = vadd.s32 %v137_v9, %v135_v5 }
  0xa4   :  { %v162_v25 = vadd.s32 %v161_v19, %v151_v18 }
  0xa5   :  { %v140_v23 = vadd.s32 %v139_v14, %v129_v12  ;;  %v69_v14 = vand.u32 127, %v68_v6 }
  0xa6   :  { %v163_v16 = vadd.s32 %v162_v25, %v153_v24 }
  0xa7   :  { %v141_v26 = vadd.s32 %v140_v23, %v131_v22  ;;  %vm70_vm1 = vcmp.lt.s32.totalorder %v69_v14, 16 }
  0xa8   :  { %v167_v0 = vadd.s32 1, %v163_v16 }
  0xa9   :  { %vm166_vm9 = vc.u32 %v141_v26, %v160_v27  ;;  %v165_v41 = vadd.s32 %v160_v27, %v141_v26 }
  0xaa   :  { %v168_v29 = vsel %vm166_vm9, %v167_v0, %v163_v16 }
  0xab   :  { %v169_v30 = vadd.s32 %v168_v29, %v164_v28  ;;  %v597_v28 = vld [vmem:[#allocation5 + $0x38] sm:$0xff]  ;;  %v596_v29 = vld [vmem:[#allocation5 + $0x30] sm:$0xff] }
  0xac   :  { %508 = vmatpush.bf16.msra.mxu1 %v597_v28 }
  0xad   :  { %v170_v31 = vadd.s32 536870912, %v169_v30 }
  0xaf   :  { %v171_v32 = vshrl.u32 %v170_v31, 30  ;;  %v594_v31 = vld [vmem:[#allocation5 + $0x20] sm:$0xff] }
  0xb0   :  { %509 = vmatpush.bf16.msra.mxu1 %v596_v29 }
  0xb1   :  { %v172_v34 = vshll.u32 %v171_v32, 30  ;;  %v195_v55 = vsub.s32 4, %v171_v32 }
  0xb3   :  { %v173_v33 = vsub.s32 %v169_v30, %v172_v34  ;;  %v196_v60 = vsel %vm73_vm12, %v195_v55, %v171_v32  ;;  %v595_v30 = vld [vmem:[#allocation5 + $0x28] sm:$0xff]  ;;  %v593_v32 = vld [vmem:[#allocation5 + $0x18] sm:$0xff]  ;;  %v592_v34 = vld [vmem:[#allocation5 + $0x10] sm:$0xff] }
  0xb4   :  { %v198_v1 = vsel %vm72_vm13, 0, %v196_v60  ;;  %510 = vmatpush.bf16.msra.mxu1 %v595_v30 }
  0xb5   :  { %vm174_vm10 = vcmp.lt.s32.totalorder %v173_v33, 0  ;;  %v175_v35 = vsub.s32 0, %v173_v33  ;;  %v215_v7 = vadd.s32 3, %v198_v1  ;;  %v370_v12 = vand.u32 3, %v198_v1 }
  0xb7   :  { %v176_v36 = vsel %vm174_vm10, %v175_v35, %v173_v33  ;;  %v216_v17 = vand.u32 3, %v215_v7  ;;  %vm371_vm14 = vcmp.lt.s32.totalorder %v370_v12, 2  ;;  %vm372_vm15 = vcmp.eq.s32.totalorder %v370_v12, 0  ;;  %v590_v35 = vld [vmem:[#allocation5] sm:$0xff] }
  0xb8   :  { %v177_v38 = vclz %v176_v36  ;;  %vm375_vm0 = vcmp.eq.s32.totalorder %v370_v12, 2  ;;  %511 = vmatpush.bf16.msra.mxu1 %v594_v31 }
  0xb9   :  { %vm217_vm2 = vcmp.lt.s32.totalorder %v216_v17, 2  ;;  %vm218_vm3 = vcmp.eq.s32.totalorder %v216_v17, 0  ;;  %vm221_vm4 = vcmp.eq.s32.totalorder %v216_v17, 2 }
  0xba   :  { %v541_v39 = vadd.s32 4294967294, %v177_v38 }
  0xbc   :  { %vm542_vm11 = vcmp.lt.s32.totalorder %v541_v39, 0  ;;  %512 = vmatpush.bf16.msra.mxu1 %v593_v32 }
  0xbd   :  { %v180_v15 = vsel %vm542_vm11, 0, %v541_v39 }
  0xbe   :  { %v181_v42 = vsub.s32 32, %v180_v15  ;;  %v185_v43 = vsub.s32 4294967266, %v180_v15  ;;  %v182_v37 = vshll.u32 %v173_v33, %v180_v15  ;;  %v612_v33 = vld [vmem:[%s828_s3] ss:$0 sm:$0xff] }
  0xc0   :  { %v183_v45 = vshrl.u32 %v165_v41, %v181_v42  ;;  %v186_v46 = vadd.s32 127, %v185_v43  ;;  %513 = vmatpush.bf16.msra.mxu1 %v592_v34 }
  0xc2   :  { %v184_v47 = vor.u32 %v183_v45, %v182_v37  ;;  %v187_v48 = vshll.u32 %v186_v46, 23 }
  0xc4   :  { %v188_v49 = vor.u32 4788187, %v187_v48  ;;  %v191_v51 = vcvt.s32.f32 %v184_v47 }
  0xc6   :  { %v189_v50 = vand.u32 2147483647, %v188_v49 }
  0xc8   :  { %v192_v52 = vmul.f32 %v191_v51, %v189_v50 }
  0xca   :  { %v193_v53 = vxor.u32 2147483648, %v192_v52 }
  0xcc   :  { %v194_v54 = vsel %vm73_vm12, %v193_v53, %v192_v52  ;;  %v613_v53 = vld [vmem:[%s830_s5] ss:$0 sm:$0xff] }
  0xcd   :  { %v197_v56 = vsel %vm72_vm13, %v756_v4, %v194_v54  ;;  %v591_v4 = vld [vmem:[#allocation5 + $0x8] sm:$0xff] }
  0xce   :  { %v199_v57 = vmul.f32 %v197_v56, %v197_v56  ;;  %514 = vmatpush.bf16.msra.mxu1 %v591_v4 }
  0xd0   :  { %v207_v58 = vmul.f32 -0.00019511016, %v199_v57  ;;  %v200_v59 = vmul.f32 -0.001358992, %v199_v57 }
  0xd2   :  { %v208_v61 = vadd.f32 0.008332121, %v207_v58  ;;  %v201_v62 = vadd.f32 0.041655596, %v200_v59  ;;  %515 = vmatpush.bf16.msra.mxu1 %v590_v35 }
  0xd4   :  { %v209_v63 = vmul.f32 %v208_v61, %v199_v57  ;;  %v202_v2 = vmul.f32 %v201_v62, %v199_v57 }
  0xd6   :  { %v210_v3 = vadd.f32 -0.16666654, %v209_v63  ;;  %v203_v5 = vadd.f32 -0.4999988, %v202_v2 }
  0xd8   :  { %v211_v9 = vmul.f32 %v210_v3, %v199_v57  ;;  %v204_v10 = vmul.f32 %v203_v5, %v199_v57 }
  0xda   :  { %v212_v8 = vadd.f32 1.0, %v211_v9  ;;  %v205_v11 = vadd.f32 1.0, %v204_v10 }
  0xdc   :  { %v213_v18 = vmul.f32 %v212_v8, %v197_v56  ;;  %v222_v19 = vxor.u32 2147483648, %v205_v11 }
  0xde   :  { %v219_v20 = vxor.u32 2147483648, %v213_v18  ;;  %v223_v22 = vsel %vm221_vm4, %v222_v19, %v213_v18  ;;  %v377_v24 = vsel %vm375_vm0, %v222_v19, %v213_v18 }
  0xe0   :  { %v220_v21 = vsel %vm218_vm3, %v205_v11, %v219_v20  ;;  %v374_v23 = vsel %vm372_vm15, %v205_v11, %v219_v20 }
  0xe1   :  { %v224_v25 = vsel %vm217_vm2, %v220_v21, %v223_v22  ;;  %v378_v26 = vsel %vm371_vm14, %v374_v23, %v377_v24 }
  0xe2   :  { %v225_v27 = vsel %vm214_vm5, nan, %v224_v25  ;;  %v379_v13 = vsel %vm214_vm5, nan, %v378_v26 }
  0xe3   :  { %v380_v16 = vsel %vm70_vm1, %v225_v27, %v379_v13 }
  0xe4   :  { %v381_v0 = vpack.c.bf16 %v380_v16, %v380_v16 }
  0xe6   :  { %554 = vmatmul.msk.bf16.vlgmr.msra.gmra.mxu0 %vm402_vm6, %v381_v0 }
 0x163   :  { %v415_v36 = vpop.f32.mrf.mxu0 }
 0x164   :  { %v416_v38 = vadd.f32 %v612_v33, %v415_v36 }
 0x166   :  { %v555_v39 = vmul.f32 -1.442695, %v416_v38 }
 0x168   :  { %614 = vpow2.f32 %v555_v39 }
 0x16b   :  { %v417_v40 = vpop.f32.mrf.mxu0 }
 0x16e   :  { %v615_v15 = vpop.eup %614 }
 0x16f   :  { %v422_v41 = vadd.f32 1.0, %v615_v15 }
 0x171   :  { %616 = vrcp.f32 %v422_v41  ;;  %v434_v37 = vand.u32 2147483648, %v422_v41  ;;  %v432_v46 = vand.u32 2147483647, %v422_v41  ;;  %vm428_vm8 = vweird.f32 %v422_v41 }
 0x173   :  { %v435_v48 = vor.u32 1.1754944e-38, %v434_v37  ;;  %vm433_vm10 = vcmp.eq.f32.partialorder %v432_v46, 8.507059e+37 }
 0x177   :  { %v617_v42 = vpop.eup %616 }
 0x178   :  { %v424_v43 = vmul.f32 %v617_v42, %v422_v41  ;;  %vm429_vm7 = vweird.f32 %v617_v42 }
 0x179   :  { %vm430_vm9 = vmor %vm428_vm8, %vm429_vm7 }
 0x17a   :  { %v425_v44 = vsub.f32 1.0, %v424_v43 }
 0x17c   :  { %v426_v45 = vmul.f32 %v617_v42, %v425_v44 }
 0x17e   :  { %v427_v47 = vadd.f32 %v617_v42, %v426_v45 }
 0x180   :  { %v431_v49 = vsel %vm430_vm9, %v617_v42, %v427_v47 }
 0x181   :  { %v436_v50 = vsel %vm433_vm10, %v435_v48, %v431_v49 }
 0x182   :  { %v438_v51 = vmul.f32 %v436_v50, %v416_v38 }
 0x184   :  { %v439_v52 = vpack.c.bf16 %v438_v51, %v438_v51 }
 0x186   :  { %516 = vmatmul.bf16.vlgmr.msra.gmra.mxu1 %v439_v52 }
 0x203   :  { %v517_v54 = vpop.f32.mrf.mxu1 }
 0x204   :  { %v518_v55 = vadd.f32 %v613_v53, %v517_v54 }
 0x206   :  { %521 = vst [vmem:[#allocation7] sm:$0xff] %v518_v55 }
 0x207   :  { %532 = dma.vmem_to_hbm [thread:$0]  %s528_s13, 128, %s530_s16, [#allocation4]  }
 0x20b   :  { %v519_v56 = vpop.f32.mrf.mxu1 }
 0x20c   :  { %694 = dma.done.wait [#allocation4], 128  }
 0x20d   :  { %695 = vsyncadd [#allocation4], 4294967168 }
 0x20e   :  { %537 = vsyncpa [#allocation3], 1 }
 0x20f   :  { %538 = vsyncpa [#allocation6], 1 }
 0x210   :  { %539 = vsyncpa [#allocation4], 1 }

</bundles_post_ra>
